<compile_context>
chip_gen: v7x
topology: tpu7x:2x2x1
jax: 0.10.0
libtpu: 0.0.40
codegen_flags: <defaults>
</compile_context>

<pallas_src>
import functools

import jax
import jax.numpy as jnp
from jax.experimental import pallas as pl
from jax.experimental.pallas import tpu as pltpu

_LANES = 128
_SUBLANES = 8


def _round_up(x, m):
    return (x + m - 1) // m * m


def _cdiv(a, b):
    return -(-a // b)


def _chip_defaults():
    """(block_rows, num_parallel, vmem_limit_bytes) per TPU generation."""
    vmem_bytes = 128 << 20
    try:
        info = pltpu.get_tpu_info()
        vmem_bytes = getattr(info, "vmem_capacity_bytes", vmem_bytes) or vmem_bytes
    except Exception:
        pass
    if vmem_bytes <= (64 << 20):
        # v7x-like: 64 MiB VMEM per TensorCore, 2 TCs, ~3.2 TB/s HBM.
        # 8192x128 f32 blocks -> 4 MiB/input, 16 MiB double-buffered: half of
        # the 32 MiB scoped limit, comfortable headroom under 64 MiB physical.
        return 8192, 2, 32 << 20
    # v5e / v6e: single TensorCore, 128 MiB physical VMEM.  Raise the scoped
    # limit explicitly so 4 MiB blocks are also safe on v5e's 16 MiB default.
    return 8192, 1, 64 << 20


def _mse_logits_kernel(x_ref, t_ref, acc_ref, *, rows, block_rows, steps):
    """One (block_rows, 128) tile -> accumulate into a resident (1, 8, 128) block."""
    p = pl.program_id(0)
    j = pl.program_id(1)

    @pl.when(j == 0)
    def _():
        acc_ref[...] = jnp.zeros_like(acc_ref)

    x = x_ref[...].astype(jnp.float32)
    t = t_ref[...].astype(jnp.float32)

    inputs = jnp.clip(jax.nn.sigmoid(x), 0.0001, 1.0 - 0.0001)
    # targets are 0/1 labels; anything else gets weight 0 (matches reference):
    #   t==1 -> 5 * (inputs - 1)^2 ; t==0 -> 1 * (inputs - 0)^2
    w = jnp.where(t == 1.0, 5.0, (t == 0.0).astype(jnp.float32))
    diff = inputs - t
    loss = w * diff * diff                                     # (block_rows, 128)

    def fold(v):
        # Sublane-aligned fold: (block_rows,128) -> (block_rows//8, 8, 128)
        # summed over axis 0 is a stack of elementwise vreg adds (VPU only).
        return v.reshape(block_rows // _SUBLANES, _SUBLANES, _LANES).sum(axis=0)

    row_start = (p * steps + j) * block_rows

    @pl.when(row_start + block_rows <= rows)         # full in-bounds block (hot path)
    def _():
        acc_ref[0] += fold(loss)

    @pl.when(row_start + block_rows > rows)          # ragged tail / clamped block
    def _():
        # Select (not multiply) so garbage/NaN rows past the logical end can't
        # leak into the accumulator.
        row_idx = row_start + jax.lax.broadcasted_iota(jnp.int32, loss.shape, 0)
        acc_ref[0] += fold(jnp.where(row_idx < rows, loss, 0.0))


@functools.partial(jax.jit, static_argnames=("block_rows", "num_parallel"))
def mse_with_logits_loss(logits, targets, *, block_rows=None, num_parallel=None):
    """MSEWithLogitsLoss with reduction='mean': sum(loss) / batch_size."""
    # TODO(synk): reduction='none' (elementwise output) is not implemented; the
    # surrounding YOLO `loss()` only uses the 'mean' path.
    assert logits.shape == targets.shape
    B = logits.shape[0]
    total = logits.size

    def_rows, def_par, vmem_limit = _chip_defaults()
    if block_rows is None:
        block_rows = def_rows
    if num_parallel is None:
        num_parallel = def_par

    # Native-dtype flatten: a free reshape, no extra HBM pass, no wrapper upcast.
    x = logits.reshape(-1)
    t = targets.reshape(-1)

    if total % _LANES != 0:
        # Rare fallback for lane-ragged totals: pad only the last partial row.
        # Padded targets = -1 -> weight 0 -> exactly zero loss contribution.
        pad = _LANES - total % _LANES
        x = jnp.pad(x, (0, pad))
        t = jnp.pad(t, (0, pad), constant_values=-1)
    rows = _cdiv(total, _LANES)
    x = x.reshape(rows, _LANES)
    t = t.reshape(rows, _LANES)

    # Don't spin up a second core-shard for tiny inputs.
    num_parallel = max(1, min(num_parallel, rows // _SUBLANES))
    tr = _round_up(min(block_rows, _round_up(_cdiv(rows, num_parallel), _SUBLANES)),
                   _SUBLANES)
    assert tr % _SUBLANES == 0  # protects the sublane-aligned VPU fold
    steps = _cdiv(rows, num_parallel * tr)
    last_block = max(_cdiv(rows, tr) - 1, 0)

    # Clamp nominal block indices so a shard that runs past the array re-reads
    # the last valid block instead of issuing a fully out-of-bounds DMA; the
    # in-kernel row mask zeroes any such contribution.
    def imap(p, j):
        return (jnp.minimum(p * steps + j, last_block), 0)

    if num_parallel >= 2:
        dim_sem = (pltpu.CORE_PARALLEL, pltpu.ARBITRARY)   # real 2-TC split (v7x)
    else:
        dim_sem = (pltpu.ARBITRARY, pltpu.ARBITRARY)

    kernel = functools.partial(_mse_logits_kernel,
                               rows=rows, block_rows=tr, steps=steps)

    partials = pl.pallas_call(
        kernel,
        out_shape=jax.ShapeDtypeStruct((num_parallel, _SUBLANES, _LANES),
                                       jnp.float32),
        grid_spec=pltpu.PrefetchScalarGridSpec(
            num_scalar_prefetch=0,
            grid=(num_parallel, steps),
            in_specs=[
                pl.BlockSpec((tr, _LANES), imap),
                pl.BlockSpec((tr, _LANES), imap),
            ],
            out_specs=pl.BlockSpec((1, _SUBLANES, _LANES), lambda p, j: (p, 0, 0)),
        ),
        compiler_params=pltpu.CompilerParams(
            dimension_semantics=dim_sem,
            vmem_limit_bytes=vmem_limit,
        ),
    )(x, t)

    # Tiny final reduction + mean-over-batch in the wrapper.
    return jnp.sum(partials) / jnp.float32(B)


def _reference(logits, targets):
    """Pure-JAX reference mirroring the PyTorch forward, for verification."""
    inputs = jnp.clip(jax.nn.sigmoid(logits), 0.0001, 1.0 - 0.0001)
    pos_id = (targets == 1.0).astype(jnp.float32)
    neg_id = (targets == 0.0).astype(jnp.float32)
    loss = 5.0 * pos_id * (inputs - targets) ** 2 + 1.0 * neg_id * inputs ** 2
    return jnp.sum(loss) / logits.shape[0]


if __name__ == "__main__":
    # conf_pred[:, :, 0]-like shapes: batch=2, grid cells = 16*16 = 256.
    B, H, W = 2, 16, 16
    N = H * W

    key = jax.random.PRNGKey(0)
    k_logits, k_obj = jax.random.split(key)

    logits = jax.random.normal(k_logits, (B, N), dtype=jnp.float32)
    # Objectness ground truth: mostly 0.0, some 1.0 (as in YOLO labels).
    targets = (jax.random.uniform(k_obj, (B, N)) < 0.1).astype(jnp.float32)

    out = mse_with_logits_loss(logits, targets)
    out = jax.block_until_ready(out)

    ref = _reference(logits, targets)
    assert jnp.allclose(out, ref, rtol=1e-5, atol=1e-5), (out, ref)

    print("KERNEL_OK")
</pallas_src>

<mosaic_0001>
module attributes {stable_mosaic.version = 11 : i64} {
  func.func @_mse_logits_kernel(%arg0: i32, %arg1: i32, %arg2: memref<8x128xf32, #tpu.memory_space<vmem>>, %arg3: memref<8x128xf32, #tpu.memory_space<vmem>>, %arg4: memref<1x8x128xf32, #tpu.memory_space<vmem>>) attributes {dimension_semantics = [#tpu.dimension_semantics<arbitrary>, #tpu.dimension_semantics<arbitrary>], iteration_bounds = array<i64: 1, 1>, scalar_prefetch = 0 : i64, scratch_operands = 0 : i64, tpu.core_type = #tpu.core_type<tc>, window_params = [{transform_indices = @transform_0, window_bounds = array<i64: 8, 128>}, {transform_indices = @transform_1, window_bounds = array<i64: 8, 128>}, {transform_indices = @transform_2, window_bounds = array<i64: 1, 8, 128>}]} {
    %c0_i32 = arith.constant 0 : i32
    %0 = arith.cmpi eq, %arg1, %c0_i32 : i32
    %1 = arith.extui %0 : i1 to i32
    %c0_i32_0 = arith.constant 0 : i32
    %2 = arith.cmpi ne, %1, %c0_i32_0 : i32
    scf.if %2 {
      %cst_14 = arith.constant 0.000000e+00 : f32
      %36 = vector.broadcast %cst_14 : f32 to vector<1x8x128xf32>
      %c0_15 = arith.constant 0 : index
      %c0_16 = arith.constant 0 : index
      %c0_17 = arith.constant 0 : index
      %37 = vector.load %arg4[%c0_15, %c0_16, %c0_17] : memref<1x8x128xf32, #tpu.memory_space<vmem>>, vector<1x8x128xf32>
      tpu.vector_store %arg4[%c0_15, %c0_16, %c0_17], %36 {strides = array<i32>} : memref<1x8x128xf32, #tpu.memory_space<vmem>>, vector<1x8x128xf32>,
    } else {
    }
    %c0 = arith.constant 0 : index
    %c0_1 = arith.constant 0 : index
    %3 = vector.load %arg2[%c0, %c0_1] : memref<8x128xf32, #tpu.memory_space<vmem>>, vector<8x128xf32>
    %c0_2 = arith.constant 0 : index
    %c0_3 = arith.constant 0 : index
    %4 = vector.load %arg3[%c0_2, %c0_3] : memref<8x128xf32, #tpu.memory_space<vmem>>, vector<8x128xf32>
    %5 = arith.negf %3 : vector<8x128xf32>
    %6 = math.exp %5 : vector<8x128xf32>
    %cst = arith.constant 1.000000e+00 : f32
    %7 = vector.broadcast %cst : f32 to vector<8x128xf32>
    %8 = arith.addf %7, %6 : vector<8x128xf32>
    %9 = arith.divf %7, %8 : vector<8x128xf32>
    %cst_4 = arith.constant 9.99999974E-5 : f32
    %cst_5 = arith.constant 0.999899983 : f32
    %10 = vector.broadcast %cst_4 : f32 to vector<8x128xf32>
    %11 = arith.maximumf %10, %9 : vector<8x128xf32>
    %12 = vector.broadcast %cst_5 : f32 to vector<8x128xf32>
    %13 = arith.minimumf %12, %11 : vector<8x128xf32>
    %cst_6 = arith.constant 1.000000e+00 : f32
    %14 = vector.broadcast %cst_6 : f32 to vector<8x128xf32>
    %15 = arith.cmpf oeq, %4, %14 : vector<8x128xf32>
    %cst_7 = arith.constant 0.000000e+00 : f32
    %16 = vector.broadcast %cst_7 : f32 to vector<8x128xf32>
    %17 = arith.cmpf oeq, %4, %16 : vector<8x128xf32>
    %18 = arith.extui %17 : vector<8x128xi1> to vector<8x128xi32>
    %19 = arith.sitofp %18 : vector<8x128xi32> to vector<8x128xf32>
    %cst_8 = arith.constant 5.000000e+00 : f32
    %20 = vector.broadcast %cst_8 : f32 to vector<8x128xf32>
    %21 = arith.select %15, %20, %19 : vector<8x128xi1>, vector<8x128xf32>
    %22 = arith.subf %13, %4 : vector<8x128xf32>
    %23 = arith.mulf %21, %22 : vector<8x128xf32>
    %24 = arith.mulf %23, %22 : vector<8x128xf32>
    %c1_i32 = arith.constant 1 : i32
    %25 = arith.muli %arg0, %c1_i32 : i32
    %26 = arith.addi %25, %arg1 : i32
    %c8_i32 = arith.constant 8 : i32
    %27 = arith.muli %26, %c8_i32 : i32
    %c8_i32_9 = arith.constant 8 : i32
    %28 = arith.addi %27, %c8_i32_9 : i32
    %c4_i32 = arith.constant 4 : i32
    %29 = arith.cmpi sle, %28, %c4_i32 : i32
    %30 = arith.extui %29 : i1 to i32
    %c0_i32_10 = arith.constant 0 : i32
    %31 = arith.cmpi ne, %30, %c0_i32_10 : i32
    scf.if %31 {
      %c0_14 = arith.constant 0 : index
      %c0_15 = arith.constant 0 : index
      %c0_16 = arith.constant 0 : index
      %36 = vector.load %arg4[%c0_14, %c0_15, %c0_16] : memref<1x8x128xf32, #tpu.memory_space<vmem>>, vector<1x8x128xf32>
      %37 = vector.shape_cast %36 : vector<1x8x128xf32> to vector<8x128xf32>
      %38 = vector.shape_cast %24 : vector<8x128xf32> to vector<1x8x128xf32>
      %cst_17 = arith.constant dense<0.000000e+00> : vector<8x128xf32>
      %39 = vector.multi_reduction <add>, %38, %cst_17 [0] : vector<1x8x128xf32> to vector<8x128xf32>
      %40 = arith.addf %37, %39 : vector<8x128xf32>
      %c0_18 = arith.constant 0 : index
      %c0_19 = arith.constant 0 : index
      %c0_20 = arith.constant 0 : index
      %41 = vector.load %arg4[%c0_18, %c0_19, %c0_20] : memref<1x8x128xf32, #tpu.memory_space<vmem>>, vector<1x8x128xf32>
      %42 = vector.shape_cast %41 : vector<1x8x128xf32> to vector<8x128xf32>
      %43 = vector.shape_cast %40 : vector<8x128xf32> to vector<1x8x128xf32>
      tpu.vector_store %arg4[%c0_18, %c0_19, %c0_20], %43 {strides = array<i32>} : memref<1x8x128xf32, #tpu.memory_space<vmem>>, vector<1x8x128xf32>,
    } else {
    }
    %c8_i32_11 = arith.constant 8 : i32
    %32 = arith.addi %27, %c8_i32_11 : i32
    %c4_i32_12 = arith.constant 4 : i32
    %33 = arith.cmpi sgt, %32, %c4_i32_12 : i32
    %34 = arith.extui %33 : i1 to i32
    %c0_i32_13 = arith.constant 0 : i32
    %35 = arith.cmpi ne, %34, %c0_i32_13 : i32
    scf.if %35 {
      %36 = tpu.iota {dimensions = array<i32: 0>} : vector<8x128xi32>
      %37 = vector.broadcast %27 : i32 to vector<8x128xi32>
      %38 = arith.addi %37, %36 : vector<8x128xi32>
      %c0_14 = arith.constant 0 : index
      %c0_15 = arith.constant 0 : index
      %c0_16 = arith.constant 0 : index
      %39 = vector.load %arg4[%c0_14, %c0_15, %c0_16] : memref<1x8x128xf32, #tpu.memory_space<vmem>>, vector<1x8x128xf32>
      %40 = vector.shape_cast %39 : vector<1x8x128xf32> to vector<8x128xf32>
      %c4_i32_17 = arith.constant 4 : i32
      %41 = vector.broadcast %c4_i32_17 : i32 to vector<8x128xi32>
      %42 = arith.cmpi slt, %38, %41 : vector<8x128xi32>
      %cst_18 = arith.constant 0.000000e+00 : f32
      %43 = vector.broadcast %cst_18 : f32 to vector<8x128xf32>
      %44 = arith.select %42, %24, %43 : vector<8x128xi1>, vector<8x128xf32>
      %45 = vector.shape_cast %44 : vector<8x128xf32> to vector<1x8x128xf32>
      %cst_19 = arith.constant dense<0.000000e+00> : vector<8x128xf32>
      %46 = vector.multi_reduction <add>, %45, %cst_19 [0] : vector<1x8x128xf32> to vector<8x128xf32>
      %47 = arith.addf %40, %46 : vector<8x128xf32>
      %c0_20 = arith.constant 0 : index
      %c0_21 = arith.constant 0 : index
      %c0_22 = arith.constant 0 : index
      %48 = vector.load %arg4[%c0_20, %c0_21, %c0_22] : memref<1x8x128xf32, #tpu.memory_space<vmem>>, vector<1x8x128xf32>
      %49 = vector.shape_cast %48 : vector<1x8x128xf32> to vector<8x128xf32>
      %50 = vector.shape_cast %47 : vector<8x128xf32> to vector<1x8x128xf32>
      tpu.vector_store %arg4[%c0_20, %c0_21, %c0_22], %50 {strides = array<i32>} : memref<1x8x128xf32, #tpu.memory_space<vmem>>, vector<1x8x128xf32>,
    } else {
    }
    return
  }
  func.func @transform_0(%arg0: i32, %arg1: i32) -> (i32, i32) {
    %c1_i32 = arith.constant 1 : i32
    %0 = arith.muli %arg0, %c1_i32 : i32
    %1 = arith.addi %0, %arg1 : i32
    %c0_i32 = arith.constant 0 : i32
    %2 = arith.minsi %1, %c0_i32 : i32
    %c0_i32_0 = arith.constant 0 : i32
    %c0_i32_1 = arith.constant 0 : i32
    return %2, %c0_i32_0 : i32, i32
  }
  func.func @transform_1(%arg0: i32, %arg1: i32) -> (i32, i32) {
    %c1_i32 = arith.constant 1 : i32
    %0 = arith.muli %arg0, %c1_i32 : i32
    %1 = arith.addi %0, %arg1 : i32
    %c0_i32 = arith.constant 0 : i32
    %2 = arith.minsi %1, %c0_i32 : i32
    %c0_i32_0 = arith.constant 0 : i32
    %c0_i32_1 = arith.constant 0 : i32
    return %2, %c0_i32_0 : i32, i32
  }
  func.func @transform_2(%arg0: i32, %arg1: i32) -> (i32, i32, i32) {
    %c0_i32 = arith.constant 0 : i32
    %c0_i32_0 = arith.constant 0 : i32
    %c0_i32_1 = arith.constant 0 : i32
    return %arg0, %c0_i32, %c0_i32_0 : i32, i32, i32
  }
}

</mosaic_0001>

<bundles_post_ra>
// kernel: mse_with_logits_loss.1
= control target key start
LH: loop header
LB: loop body
LE: loop exit
PB: predicated region body
PF: predicated region fallthrough
CT: control target
= control target key end

     0   :  { %7 = vsyncpa [#allocation3], 0  ;;  %s281_s0 = inlined_call_operand.hbm [shape: f32[4,128], index: 0, kind: input, shape index: {}]   ;;  %s282_s1 = inlined_call_operand.hbm [shape: f32[4,128], index: 1, kind: input, shape index: {}]   ;;  %s283_s2 = inlined_call_operand.hbm [shape: f32[1,8,128], index: 2, kind: output, shape index: {}]  }
   0x1   :  { %8 = vsyncpa [#allocation6], 0 }
   0x2   :  { %9 = vsyncpa [#allocation4], 0 }
   0x3   :  { %20 = vsyncadd [#allocation3], 64  ;;  %s224_s9 = smov [#allocation2]   ;;  %s152_s13 = scalar_lea.hbm %s281_s0, 64 }
   0x4   :  { %s25_s10 = sshll.u32 %s224_s9, 4  ;;  %p153_p0 = scmp.ne.s32.totalorder %s281_s0, %s152_s13  ;;  %s26_s10 = int_to_ptr.vmem [resolvable:$true] %s25_s10 }
   0x5   :  { %p156_p1 = scmp.lt.u32.totalorder %s152_s13, %s281_s0 }
   0x7   :  { %p158_p2 = pnand %p156_p1, %p153_p0 }
   0x9   :  { %161 = shalt.err (!%p158_p2)
}
   0xa   :  { %s162_s18 = scalar_lea.vmem %s26_s10, 64  ;;  %s166_s19 = scalar_lea.vmem %s26_s10, 128 }
   0xb   :  { %p163_p3 = scmp.ne.s32.totalorder %s26_s10, %s162_s18  ;;  %p167_p4 = scmp.lt.s32.totalorder %s26_s10, %s26_s10 }
   0xc   :  { %p168_p5 = scmp.lt.s32.totalorder %s166_s19, %s162_s18 }
   0xe   :  { %p169_p6 = por %p168_p5, %p167_p4 }
  0x10   :  { %p170_p7 = pnand %p169_p6, %p163_p3 }
  0x12   :  { %173 = shalt.err (!%p170_p7)
}
  0x13   :  { %s225_s20 = smov 64   ;;  %s226_s21 = smov 4  }
  0x14   :  { %31 = dma.hbm_to_vmem [thread:$0]  %s281_s0, 64, %s26_s10, [#allocation3], %s225_s20, %s225_s20, %s226_s21  }
  0x15   :  { %42 = vsyncadd [#allocation6], 64  ;;  %s227_s24 = smov [#allocation5]   ;;  %s174_s28 = scalar_lea.hbm %s282_s1, 64 }
  0x16   :  { %s47_s25 = sshll.u32 %s227_s24, 4  ;;  %p175_p8 = scmp.ne.s32.totalorder %s282_s1, %s174_s28  ;;  %s48_s25 = int_to_ptr.vmem [resolvable:$true] %s47_s25 }
  0x17   :  { %p178_p9 = scmp.lt.u32.totalorder %s174_s28, %s282_s1 }
  0x19   :  { %p180_p10 = pnand %p178_p9, %p175_p8 }
  0x1b   :  { %183 = shalt.err (!%p180_p10)
}
  0x1c   :  { %s184_s5 = scalar_lea.vmem %s48_s25, 64  ;;  %s188_s0 = scalar_lea.vmem %s48_s25, 128 }
  0x1d   :  { %p185_p11 = scmp.ne.s32.totalorder %s48_s25, %s184_s5  ;;  %p189_p12 = scmp.lt.s32.totalorder %s48_s25, %s48_s25 }
  0x1e   :  { %p190_p13 = scmp.lt.s32.totalorder %s188_s0, %s184_s5 }
  0x20   :  { %p191_p0 = por %p190_p13, %p189_p12 }
  0x22   :  { %p192_p1 = pnand %p191_p0, %p185_p11 }
  0x24   :  { %195 = shalt.err (!%p192_p1)
}
  0x25   :  { %53 = dma.hbm_to_vmem [thread:$0]  %s282_s1, 64, %s48_s25, [#allocation6], %s225_s20, %s225_s20, %s226_s21  }
  0x26   :  { %218 = dma.done.wait [#allocation3], 128  }
  0x27   :  { %219 = vsyncadd [#allocation3], 4294967168 }
  0x28   :  { %220 = dma.done.wait [#allocation6], 128  }
  0x29   :  { %221 = vsyncadd [#allocation6], 4294967168  ;;  %v77_v0 = vld [vmem:[#allocation2] sm:$0xff]  ;;  %v78_v4 = vld [vmem:[#allocation5] sm:$0xff]  ;;  %v110_v6 = vlaneseq  ;;  %v228_v8 = vmov 0.0   ;;  %s229_s1 = smov [#allocation7]  }
  0x2a   :  { %v140_v1 = vmul.f32 -1.442695, %v77_v0  ;;  %vm88_vm0 = vcmp.eq.f32.partialorder %v78_v4, 0.0  ;;  %vm87_vm1 = vcmp.eq.f32.partialorder %v78_v4, 1.0  ;;  %s126_s8 = sshll.u32 %s229_s1, 4  ;;  %s127_s8 = int_to_ptr.vmem [resolvable:$true] %s126_s8 }
  0x2b   :  { %v141_v9 = vsel %vm88_vm0, 1.0, %v228_v8  ;;  %v111_v12 = vshrl.u32 %v110_v6, 7  ;;  %s196_s9 = scalar_lea.vmem %s127_s8, 128  ;;  %p201_p3 = scmp.lt.s32.totalorder %s127_s8, %s127_s8 }
  0x2c   :  { %148 = vpow2.f32 %v140_v1  ;;  %v91_v11 = vsel %vm87_vm1, 5.0, %v141_v9  ;;  %p197_p2 = scmp.ne.s32.totalorder %s127_s8, %s196_s9  ;;  %p202_p4 = scmp.lt.s32.totalorder %s196_s9, %s196_s9 }
  0x2d   :  { %vm115_vm2 = vcmp.lt.s32.totalorder %v111_v12, 4 }
  0x2e   :  { %p203_p5 = por %p202_p4, %p201_p3 }
  0x30   :  { %p204_p6 = pnand %p203_p5, %p197_p2 }
  0x36   :  { %v149_v2 = vpop.eup %148 }
  0x37   :  { %v82_v3 = vadd.f32 1.0, %v149_v2 }
  0x39   :  { %150 = vrcp.f32 %v82_v3 }
  0x43   :  { %v151_v5 = vpop.eup %150 }
  0x44   :  { %v85_v7 = vmax.f32 %v151_v5, 0.0001 }
  0x46   :  { %v86_v10 = vmin.f32 %v85_v7, 0.9999 }
  0x48   :  { %v92_v13 = vsub.f32 %v86_v10, %v78_v4 }
  0x4a   :  { %v93_v14 = vmul.f32 %v92_v13, %v91_v11 }
  0x4c   :  { %v94_v15 = vmul.f32 %v93_v14, %v92_v13 }
  0x4e   :  { %v116_v16 = vsel %vm115_vm2, %v94_v15, 0.0 }
  0x4f   :  { %119 = vst [vmem:[#allocation7] sm:$0xff] %v116_v16 }
  0x50   :  { %207 = shalt.err (!%p204_p6)
}
  0x51   :  { %s208_s12 = scalar_lea.hbm %s283_s2, 128 }
  0x52   :  { %p209_p7 = scmp.ne.s32.totalorder %s283_s2, %s208_s12  ;;  %p212_p8 = scmp.lt.u32.totalorder %s208_s12, %s283_s2 }
  0x54   :  { %p214_p9 = pnand %p212_p8, %p209_p7 }
  0x56   :  { %217 = shalt.err (!%p214_p9)
}
  0x57   :  { %129 = dma.vmem_to_hbm [thread:$0]  %s127_s8, 128, %s283_s2, [#allocation4]  }
  0x58   :  { %222 = dma.done.wait [#allocation4], 128  }
  0x59   :  { %223 = vsyncadd [#allocation4], 4294967168 }
  0x5a   :  { %133 = vsyncpa [#allocation3], 1 }
  0x5b   :  { %134 = vsyncpa [#allocation6], 1 }
  0x5c   :  { %135 = vsyncpa [#allocation4], 1 }

</bundles_post_ra>
